<compile_context>
chip_gen: v6e
topology: v6e:2x2x1
jax: 0.10.0
libtpu: 0.0.40
codegen_flags: <defaults>
</compile_context>

<pallas_src>
from functools import partial

import jax
import jax.numpy as jnp
from jax.experimental import pallas as pl
from jax.experimental.pallas import tpu as pltpu

EPS = 1e-5
LANE = 128   # lane width; every feature axis is padded to this
KPAD = 64    # sublane (contraction) padding of the packed weights


def _batchnorm(h, gamma, beta):
    """Training-mode BN (batch stats, biased variance), two-pass moments."""
    inv_n = 1.0 / h.shape[0]
    mean = jnp.sum(h, axis=0, keepdims=True) * inv_n
    d = h - mean
    var = jnp.sum(d * d, axis=0, keepdims=True) * inv_n
    return d * (jax.lax.rsqrt(var + EPS) * gamma) + beta


def kidney_kernel(x_ref, w_ref, v_ref, o_ref):
    # x_ref: (B, 128) f32   lane-padded input
    # w_ref: (2, 64, 128)   packed weights: [fc1, fc2], zero-padded
    # v_ref: (16, 128)      packed rows: g0,be0,b1,g1,be1,b2,g2,be2,b3,w3,pad..
    # o_ref: (B, 128)       lane-dense output (sigmoid logit broadcast; col 0 real)
    x = x_ref[...]
    vec = v_ref[...]

    g0, be0 = vec[0:1], vec[1:2]
    b1, g1, be1 = vec[2:3], vec[3:4], vec[4:5]
    b2, g2, be2 = vec[5:6], vec[6:7], vec[7:8]
    b3_row, w3_row = vec[8:9], vec[9:10]

    # norm0
    h = _batchnorm(x, g0, be0)
    # fc1 + relu + norm1   (K=64: padded lanes of h are exactly zero)
    h = jnp.dot(h[:, :KPAD], w_ref[0], preferred_element_type=jnp.float32) + b1
    h = jnp.maximum(h, 0.0)
    h = _batchnorm(h, g1, be1)
    # fc2 + relu + norm2
    h = jnp.dot(h[:, :KPAD], w_ref[1], preferred_element_type=jnp.float32) + b2
    h = jnp.maximum(h, 0.0)
    h = _batchnorm(h, g2, be2)
    # fc3 + sigmoid on VPU/XLU: single real output column, so no MXU push.
    b3 = jnp.sum(b3_row, axis=-1, keepdims=True)                 # (1,1) == b3
    logit = jnp.sum(h * w3_row, axis=-1, keepdims=True) + b3     # (B,1)
    o_ref[...] = jnp.broadcast_to(jax.nn.sigmoid(logit), o_ref.shape)


def pack_params(p, input_size=9, output_size=1):
    """One-time packing of the 12 small tensors into 2 lane-dense slabs."""
    # TODO(synk): output_size > 1 would need fc3 back on the MXU (or one
    # w3 row + reduce per output column); the module default is 1.
    assert output_size == 1, "VPU fc3 path packs a single output column"

    w = jnp.zeros((2, KPAD, LANE), jnp.float32)
    w = w.at[0, :input_size, :64].set(p["w1"])
    w = w.at[1, :64, :32].set(p["w2"])

    v = jnp.zeros((16, LANE), jnp.float32)
    v = v.at[0, :input_size].set(p["g0"][0])
    v = v.at[1, :input_size].set(p["be0"][0])
    v = v.at[2, :64].set(p["b1"][0])
    v = v.at[3, :64].set(p["g1"][0])
    v = v.at[4, :64].set(p["be1"][0])
    v = v.at[5, :32].set(p["b2"][0])
    v = v.at[6, :32].set(p["g2"][0])
    v = v.at[7, :32].set(p["be2"][0])
    v = v.at[8, :output_size].set(p["b3"][0])
    v = v.at[9, :32].set(p["w3"][:, 0])
    return w, v


@partial(jax.jit, static_argnames=("in_size", "out_size"))
def kidney_forward(x, w, v, *, in_size=9, out_size=1):
    """x: (B, in_size) float32. Returns (B, out_size) float32.

    Pad, kernel, and output slice all live inside one jitted executable.
    """
    B = x.shape[0]
    xp = jnp.zeros((B, LANE), jnp.float32).at[:, :in_size].set(
        x.astype(jnp.float32))

    # Tiny model: whole batch + packed weights is < 0.1 MiB of VMEM, so a
    # single grid-less block is optimal here (see TODO for batched redesign).
    out = pl.pallas_call(
        kidney_kernel,
        out_shape=jax.ShapeDtypeStruct((B, LANE), jnp.float32),
        in_specs=[pl.BlockSpec(memory_space=pltpu.MemorySpace.VMEM)] * 3,
        out_specs=pl.BlockSpec(memory_space=pltpu.MemorySpace.VMEM),
    )(xp, w, v)
    return out[:, :out_size]


def init_params(key, input_size=9, output_size=1):
    """Deterministic synthetic parameters matching KidneyDiseaseModel.__init__."""
    k1, k2, k3, k4, k5, k6 = jax.random.split(key, 6)

    def linear(kw, kb, fan_in, fan_out):
        bound = 1.0 / jnp.sqrt(fan_in)
        w = jax.random.uniform(kw, (fan_in, fan_out), jnp.float32, -bound, bound)
        b = jax.random.uniform(kb, (1, fan_out), jnp.float32, -bound, bound)
        return w, b

    w1, b1 = linear(k1, k2, input_size, 64)
    w2, b2 = linear(k3, k4, 64, 32)
    w3, b3 = linear(k5, k6, 32, output_size)

    return dict(
        g0=jnp.ones((1, input_size), jnp.float32),
        be0=jnp.zeros((1, input_size), jnp.float32),
        w1=w1, b1=b1,
        g1=jnp.ones((1, 64), jnp.float32),
        be1=jnp.zeros((1, 64), jnp.float32),
        w2=w2, b2=b2,
        g2=jnp.ones((1, 32), jnp.float32),
        be2=jnp.zeros((1, 32), jnp.float32),
        w3=w3, b3=b3,
    )


def reference_forward(x, p):
    """Pure-JAX reference mirroring the PyTorch forward (training-mode BN)."""
    def bn(h, g, b):
        m = jnp.mean(h, axis=0, keepdims=True)
        v = jnp.mean((h - m) ** 2, axis=0, keepdims=True)
        return (h - m) / jnp.sqrt(v + EPS) * g + b

    h = bn(x, p["g0"], p["be0"])
    h = jnp.maximum(h @ p["w1"] + p["b1"], 0.0)
    h = bn(h, p["g1"], p["be1"])
    h = jnp.maximum(h @ p["w2"] + p["b2"], 0.0)
    h = bn(h, p["g2"], p["be2"])
    h = h @ p["w3"] + p["b3"]
    return jax.nn.sigmoid(h)


if __name__ == "__main__":
    key = jax.random.PRNGKey(0)
    kx, kp = jax.random.split(key)

    B, INPUT_SIZE, OUTPUT_SIZE = 8, 9, 1
    x = jax.random.normal(kx, (B, INPUT_SIZE), jnp.float32)
    params = init_params(kp, INPUT_SIZE, OUTPUT_SIZE)
    w_packed, v_packed = pack_params(params, INPUT_SIZE, OUTPUT_SIZE)

    out = kidney_forward(x, w_packed, v_packed,
                         in_size=INPUT_SIZE, out_size=OUTPUT_SIZE)
    out = jax.block_until_ready(out)

    ref = reference_forward(x, params)
    assert out.shape == (B, OUTPUT_SIZE)
    assert jnp.allclose(out, ref, atol=1e-5, rtol=1e-5), (out, ref)

    print("KERNEL_OK")
</pallas_src>

<mosaic_0001>
module attributes {stable_mosaic.version = 11 : i64} {
  func.func @kidney_kernel(%arg0: memref<8x128xf32, #tpu.memory_space<vmem>>, %arg1: memref<2x64x128xf32, #tpu.memory_space<vmem>>, %arg2: memref<16x128xf32, #tpu.memory_space<vmem>>, %arg3: memref<8x128xf32, #tpu.memory_space<vmem>>) attributes {dimension_semantics = [], scalar_prefetch = 0 : i64, scratch_operands = 0 : i64, tpu.core_type = #tpu.core_type<tc>} {
    %c0 = arith.constant 0 : index
    %c0_0 = arith.constant 0 : index
    %0 = vector.load %arg0[%c0, %c0_0] : memref<8x128xf32, #tpu.memory_space<vmem>>, vector<8x128xf32>
    %c0_1 = arith.constant 0 : index
    %c0_2 = arith.constant 0 : index
    %1 = vector.load %arg2[%c0_1, %c0_2] : memref<16x128xf32, #tpu.memory_space<vmem>>, vector<16x128xf32>
    %2 = vector.extract_strided_slice %1 {offsets = [0, 0], sizes = [1, 128], strides = [1, 1]} : vector<16x128xf32> to vector<1x128xf32>
    %3 = vector.extract_strided_slice %1 {offsets = [1, 0], sizes = [1, 128], strides = [1, 1]} : vector<16x128xf32> to vector<1x128xf32>
    %4 = vector.extract_strided_slice %1 {offsets = [2, 0], sizes = [1, 128], strides = [1, 1]} : vector<16x128xf32> to vector<1x128xf32>
    %5 = vector.extract_strided_slice %1 {offsets = [3, 0], sizes = [1, 128], strides = [1, 1]} : vector<16x128xf32> to vector<1x128xf32>
    %6 = vector.extract_strided_slice %1 {offsets = [4, 0], sizes = [1, 128], strides = [1, 1]} : vector<16x128xf32> to vector<1x128xf32>
    %7 = vector.extract_strided_slice %1 {offsets = [5, 0], sizes = [1, 128], strides = [1, 1]} : vector<16x128xf32> to vector<1x128xf32>
    %8 = vector.extract_strided_slice %1 {offsets = [6, 0], sizes = [1, 128], strides = [1, 1]} : vector<16x128xf32> to vector<1x128xf32>
    %9 = vector.extract_strided_slice %1 {offsets = [7, 0], sizes = [1, 128], strides = [1, 1]} : vector<16x128xf32> to vector<1x128xf32>
    %10 = vector.extract_strided_slice %1 {offsets = [8, 0], sizes = [1, 128], strides = [1, 1]} : vector<16x128xf32> to vector<1x128xf32>
    %11 = vector.extract_strided_slice %1 {offsets = [9, 0], sizes = [1, 128], strides = [1, 1]} : vector<16x128xf32> to vector<1x128xf32>
    %cst = arith.constant dense<0.000000e+00> : vector<128xf32>
    %12 = vector.multi_reduction <add>, %0, %cst [0] : vector<8x128xf32> to vector<128xf32>
    %13 = vector.shape_cast %12 : vector<128xf32> to vector<1x128xf32>
    %cst_3 = arith.constant 1.250000e-01 : f32
    %14 = vector.broadcast %cst_3 : f32 to vector<1x128xf32>
    %15 = arith.mulf %13, %14 : vector<1x128xf32>
    %16 = vector.broadcast %15 : vector<1x128xf32> to vector<8x128xf32>
    %17 = arith.subf %0, %16 : vector<8x128xf32>
    %18 = arith.mulf %17, %17 : vector<8x128xf32>
    %cst_4 = arith.constant dense<0.000000e+00> : vector<128xf32>
    %19 = vector.multi_reduction <add>, %18, %cst_4 [0] : vector<8x128xf32> to vector<128xf32>
    %20 = vector.shape_cast %19 : vector<128xf32> to vector<1x128xf32>
    %cst_5 = arith.constant 1.250000e-01 : f32
    %21 = vector.broadcast %cst_5 : f32 to vector<1x128xf32>
    %22 = arith.mulf %20, %21 : vector<1x128xf32>
    %cst_6 = arith.constant 9.99999974E-6 : f32
    %23 = vector.broadcast %cst_6 : f32 to vector<1x128xf32>
    %24 = arith.addf %22, %23 : vector<1x128xf32>
    %25 = math.rsqrt %24 : vector<1x128xf32>
    %26 = arith.mulf %25, %2 : vector<1x128xf32>
    %27 = vector.broadcast %26 : vector<1x128xf32> to vector<8x128xf32>
    %28 = arith.mulf %17, %27 : vector<8x128xf32>
    %29 = vector.broadcast %3 : vector<1x128xf32> to vector<8x128xf32>
    %30 = arith.addf %28, %29 : vector<8x128xf32>
    %31 = vector.extract_strided_slice %30 {offsets = [0, 0], sizes = [8, 64], strides = [1, 1]} : vector<8x128xf32> to vector<8x64xf32>
    %c0_7 = arith.constant 0 : index
    %c0_8 = arith.constant 0 : index
    %c0_9 = arith.constant 0 : index
    %32 = vector.load %arg1[%c0_7, %c0_8, %c0_9] : memref<2x64x128xf32, #tpu.memory_space<vmem>>, vector<1x64x128xf32>
    %33 = vector.shape_cast %32 : vector<1x64x128xf32> to vector<64x128xf32>
    %cst_10 = arith.constant dense<0.000000e+00> : vector<8x128xf32>
    %34 = tpu.matmul %31, %33, %cst_10 {dimension_numbers = #tpu.dot_dimension_numbers<[1], [0], [0], [1], [0, 0, 1, 1], [], []>} : vector<8x64xf32>, vector<64x128xf32>, vector<8x128xf32> -> vector<8x128xf32>
    %35 = vector.broadcast %4 : vector<1x128xf32> to vector<8x128xf32>
    %36 = arith.addf %34, %35 : vector<8x128xf32>
    %cst_11 = arith.constant 0.000000e+00 : f32
    %37 = vector.broadcast %cst_11 : f32 to vector<8x128xf32>
    %38 = arith.maximumf %36, %37 : vector<8x128xf32>
    %cst_12 = arith.constant dense<0.000000e+00> : vector<128xf32>
    %39 = vector.multi_reduction <add>, %38, %cst_12 [0] : vector<8x128xf32> to vector<128xf32>
    %40 = vector.shape_cast %39 : vector<128xf32> to vector<1x128xf32>
    %cst_13 = arith.constant 1.250000e-01 : f32
    %41 = vector.broadcast %cst_13 : f32 to vector<1x128xf32>
    %42 = arith.mulf %40, %41 : vector<1x128xf32>
    %43 = vector.broadcast %42 : vector<1x128xf32> to vector<8x128xf32>
    %44 = arith.subf %38, %43 : vector<8x128xf32>
    %45 = arith.mulf %44, %44 : vector<8x128xf32>
    %cst_14 = arith.constant dense<0.000000e+00> : vector<128xf32>
    %46 = vector.multi_reduction <add>, %45, %cst_14 [0] : vector<8x128xf32> to vector<128xf32>
    %47 = vector.shape_cast %46 : vector<128xf32> to vector<1x128xf32>
    %cst_15 = arith.constant 1.250000e-01 : f32
    %48 = vector.broadcast %cst_15 : f32 to vector<1x128xf32>
    %49 = arith.mulf %47, %48 : vector<1x128xf32>
    %cst_16 = arith.constant 9.99999974E-6 : f32
    %50 = vector.broadcast %cst_16 : f32 to vector<1x128xf32>
    %51 = arith.addf %49, %50 : vector<1x128xf32>
    %52 = math.rsqrt %51 : vector<1x128xf32>
    %53 = arith.mulf %52, %5 : vector<1x128xf32>
    %54 = vector.broadcast %53 : vector<1x128xf32> to vector<8x128xf32>
    %55 = arith.mulf %44, %54 : vector<8x128xf32>
    %56 = vector.broadcast %6 : vector<1x128xf32> to vector<8x128xf32>
    %57 = arith.addf %55, %56 : vector<8x128xf32>
    %58 = vector.extract_strided_slice %57 {offsets = [0, 0], sizes = [8, 64], strides = [1, 1]} : vector<8x128xf32> to vector<8x64xf32>
    %c1 = arith.constant 1 : index
    %c0_17 = arith.constant 0 : index
    %c0_18 = arith.constant 0 : index
    %59 = vector.load %arg1[%c1, %c0_17, %c0_18] : memref<2x64x128xf32, #tpu.memory_space<vmem>>, vector<1x64x128xf32>
    %60 = vector.shape_cast %59 : vector<1x64x128xf32> to vector<64x128xf32>
    %cst_19 = arith.constant dense<0.000000e+00> : vector<8x128xf32>
    %61 = tpu.matmul %58, %60, %cst_19 {dimension_numbers = #tpu.dot_dimension_numbers<[1], [0], [0], [1], [0, 0, 1, 1], [], []>} : vector<8x64xf32>, vector<64x128xf32>, vector<8x128xf32> -> vector<8x128xf32>
    %62 = vector.broadcast %7 : vector<1x128xf32> to vector<8x128xf32>
    %63 = arith.addf %61, %62 : vector<8x128xf32>
    %cst_20 = arith.constant 0.000000e+00 : f32
    %64 = vector.broadcast %cst_20 : f32 to vector<8x128xf32>
    %65 = arith.maximumf %63, %64 : vector<8x128xf32>
    %cst_21 = arith.constant dense<0.000000e+00> : vector<128xf32>
    %66 = vector.multi_reduction <add>, %65, %cst_21 [0] : vector<8x128xf32> to vector<128xf32>
    %67 = vector.shape_cast %66 : vector<128xf32> to vector<1x128xf32>
    %cst_22 = arith.constant 1.250000e-01 : f32
    %68 = vector.broadcast %cst_22 : f32 to vector<1x128xf32>
    %69 = arith.mulf %67, %68 : vector<1x128xf32>
    %70 = vector.broadcast %69 : vector<1x128xf32> to vector<8x128xf32>
    %71 = arith.subf %65, %70 : vector<8x128xf32>
    %72 = arith.mulf %71, %71 : vector<8x128xf32>
    %cst_23 = arith.constant dense<0.000000e+00> : vector<128xf32>
    %73 = vector.multi_reduction <add>, %72, %cst_23 [0] : vector<8x128xf32> to vector<128xf32>
    %74 = vector.shape_cast %73 : vector<128xf32> to vector<1x128xf32>
    %cst_24 = arith.constant 1.250000e-01 : f32
    %75 = vector.broadcast %cst_24 : f32 to vector<1x128xf32>
    %76 = arith.mulf %74, %75 : vector<1x128xf32>
    %cst_25 = arith.constant 9.99999974E-6 : f32
    %77 = vector.broadcast %cst_25 : f32 to vector<1x128xf32>
    %78 = arith.addf %76, %77 : vector<1x128xf32>
    %79 = math.rsqrt %78 : vector<1x128xf32>
    %80 = arith.mulf %79, %8 : vector<1x128xf32>
    %81 = vector.broadcast %80 : vector<1x128xf32> to vector<8x128xf32>
    %82 = arith.mulf %71, %81 : vector<8x128xf32>
    %83 = vector.broadcast %9 : vector<1x128xf32> to vector<8x128xf32>
    %84 = arith.addf %82, %83 : vector<8x128xf32>
    %cst_26 = arith.constant dense<0.000000e+00> : vector<1xf32>
    %85 = vector.multi_reduction <add>, %10, %cst_26 [1] : vector<1x128xf32> to vector<1xf32>
    %86 = vector.shape_cast %85 : vector<1xf32> to vector<1x1xf32>
    %87 = vector.broadcast %11 : vector<1x128xf32> to vector<8x128xf32>
    %88 = arith.mulf %84, %87 : vector<8x128xf32>
    %cst_27 = arith.constant dense<0.000000e+00> : vector<8xf32>
    %89 = vector.multi_reduction <add>, %88, %cst_27 [1] : vector<8x128xf32> to vector<8xf32>
    %90 = vector.shape_cast %89 : vector<8xf32> to vector<8x1xf32>
    %91 = vector.broadcast %86 : vector<1x1xf32> to vector<8x1xf32>
    %92 = arith.addf %90, %91 : vector<8x1xf32>
    %93 = arith.negf %92 : vector<8x1xf32>
    %94 = math.exp %93 : vector<8x1xf32>
    %cst_28 = arith.constant 1.000000e+00 : f32
    %95 = vector.broadcast %cst_28 : f32 to vector<8x1xf32>
    %96 = arith.addf %95, %94 : vector<8x1xf32>
    %97 = arith.divf %95, %96 : vector<8x1xf32>
    %98 = vector.shape_cast %97 : vector<8x1xf32> to vector<8x1xf32>
    %99 = vector.broadcast %98 : vector<8x1xf32> to vector<8x128xf32>
    %c0_29 = arith.constant 0 : index
    %c0_30 = arith.constant 0 : index
    %100 = vector.load %arg3[%c0_29, %c0_30] : memref<8x128xf32, #tpu.memory_space<vmem>>, vector<8x128xf32>
    tpu.vector_store %arg3[%c0_29, %c0_30], %99 {strides = array<i32>} : memref<8x128xf32, #tpu.memory_space<vmem>>, vector<8x128xf32>,
    return
  }
}

</mosaic_0001>

<bundles_post_ra>
// kernel: kidney_forward.1
= control target key start
LH: loop header
LB: loop body
LE: loop exit
PB: predicated region body
PF: predicated region fallthrough
CT: control target
= control target key end

     0   :  { %8 = vsyncpa [#allocation3], 0  ;;  %s416_s12 = smov [#allocation2]   ;;  %s504_s0 = inlined_call_operand.vmem [shape: f32[8,128], index: 0, kind: input, shape index: {}]   ;;  %s505_s1 = inlined_call_operand.hbm [shape: f32[2,64,128], index: 1, kind: input, shape index: {}]   ;;  %s506_s2 = inlined_call_operand.vmem [shape: f32[16,128], index: 2, kind: input, shape index: {}]   ;;  %s507_s3 = inlined_call_operand.vmem [shape: f32[8,128], index: 3, kind: output, shape index: {}]  }
   0x1   :  { %s16_s13 = sshll.u32 %s416_s12, 4  ;;  %s17_s13 = int_to_ptr.vmem [resolvable:$true] %s16_s13 }
   0x2   :  { %s402_s14 = scalar_lea.vmem %s17_s13, 2048  ;;  %p407_p1 = scmp.lt.s32.totalorder %s17_s13, %s17_s13 }
   0x3   :  { %p403_p0 = scmp.ne.s32.totalorder %s17_s13, %s402_s14  ;;  %p408_p2 = scmp.lt.s32.totalorder %s402_s14, %s402_s14 }
   0x5   :  { %p409_p3 = por %p408_p2, %p407_p1 }
   0x7   :  { %p410_p4 = pnand %p409_p3, %p403_p0 }
   0x9   :  { %413 = shalt.err (!%p410_p4)
}
   0xa   :  { %s417_s15 = smov 128   ;;  %s418_s16 = smov 8  }
   0xb   :  { %22 = dma.hbm_to_vmem [thread:$0]  %s505_s1, 2048, %s17_s13, [#allocation3], %s417_s15, %s417_s15, %s418_s16  }
   0xc   :  { %414 = dma.done.wait [#allocation3], 2048  }
   0xd   :  { %415 = vsyncadd [#allocation3], 4294965248  ;;  %v419_v0 = vmov 0.0   ;;  %vm420_vm0 = vmmov 0   ;;  %v67_v1 = vld [vmem:[#allocation2 + $0x38] sm:$0xff]  ;;  %v66_v2 = vld [vmem:[#allocation2 + $0x30] sm:$0xff]  ;;  %v50_v27 = vlaneseq }
   0xe   :  { %341 = vmatprep.subr.mxu0 %v419_v0  ;;  %357 = vmatprep.mubr.msk.f32.mxu0 %vm420_vm0, %v419_v0  ;;  %v65_v3 = vld [vmem:[#allocation2 + $0x28] sm:$0xff]  ;;  %v28_v4 = vld [vmem:[%s504_s0] sm:$0xff]  ;;  %v63_v8 = vld [vmem:[#allocation2 + $0x18] sm:$0xff]  ;;  %vm72_vm1 = vcmask 523264   ;;  %vm292_vm2 = vcmask 1040384  }
   0xf   :  { %360 = vmatprep.subr.mxu1 %v419_v0  ;;  %376 = vmatprep.mubr.msk.f32.mxu1 %vm420_vm0, %v419_v0  ;;  %v31_v5 = vrot.slane %v28_v4, 4  ;;  %v64_v6 = vld [vmem:[#allocation2 + $0x20] sm:$0xff]  ;;  %v62_v10 = vld [vmem:[#allocation2 + $0x10] sm:$0xff]  ;;  %v61_v12 = vld [vmem:[#allocation2 + $0x8] sm:$0xff]  ;;  %v458_v28 = vshrl.u32 %v50_v27, 7 }
  0x10   :  { %342 = vmatpush3.msra.mxu0 %v67_v1  ;;  %v60_v14 = vld [vmem:[#allocation2] sm:$0xff]  ;;  %v184_v38 = vld [vmem:[#allocation2 + $0x78] sm:$0xff]  ;;  %v183_v39 = vld [vmem:[#allocation2 + $0x70] sm:$0xff] }
  0x11   :  { %343 = vmatprep.subr.mxu0 %v419_v0  ;;  %v32_v7 = vadd.f32 %v31_v5, %v28_v4  ;;  %v463_v29 = vld [vmem:[%s506_s2] sm:$0xff]  ;;  %v52_v30 = vsub.s32 0, %v458_v28  ;;  %v57_v31 = vsub.s32 1, %v458_v28  ;;  %361 = vmatpush3.msra.mxu1 %v184_v38  ;;  %v182_v40 = vld [vmem:[#allocation2 + $0x68] sm:$0xff]  ;;  %v180_v42 = vld [vmem:[#allocation2 + $0x58] sm:$0xff]  ;;  %v70_v46 = vsub.s32 2, %v458_v28 }
  0x12   :  { %344 = vmatpush3.msra.mxu0 %v66_v2  ;;  %362 = vmatprep.subr.mxu1 %v419_v0  ;;  %v181_v41 = vld [vmem:[#allocation2 + $0x60] sm:$0xff]  ;;  %v179_v43 = vld [vmem:[#allocation2 + $0x50] sm:$0xff]  ;;  %v178_v44 = vld [vmem:[#allocation2 + $0x48] sm:$0xff]  ;;  %v168_v5 = vsub.s32 3, %v458_v28 }
  0x13   :  { %345 = vmatprep.subr.mxu0 %v419_v0  ;;  %v33_v9 = vrot.slane %v32_v7, 2  ;;  %v58_v35 = vrot.slane %v463_v29, %v57_v31  ;;  %363 = vmatpush3.msra.mxu1 %v183_v39  ;;  %v177_v45 = vld [vmem:[#allocation2 + $0x40] sm:$0xff]  ;;  %v71_v47 = vrot.slane %v463_v29, %v70_v46 }
  0x14   :  { %346 = vmatpush3.msra.mxu0 %v65_v3  ;;  %364 = vmatprep.subr.mxu1 %v419_v0 }
  0x15   :  { %347 = vmatprep.subr.mxu0 %v419_v0  ;;  %v34_v11 = vadd.f32 %v33_v9, %v32_v7  ;;  %365 = vmatpush3.msra.mxu1 %v182_v40 }
  0x16   :  { %348 = vmatpush3.msra.mxu0 %v64_v6  ;;  %366 = vmatprep.subr.mxu1 %v419_v0  ;;  %v173_v6 = vsub.s32 4, %v458_v28 }
  0x17   :  { %349 = vmatprep.subr.mxu0 %v419_v0  ;;  %v35_v13 = vrot.slane %v34_v11, 1  ;;  %367 = vmatpush3.msra.mxu1 %v181_v41 }
  0x18   :  { %350 = vmatpush3.msra.mxu0 %v63_v8  ;;  %368 = vmatprep.subr.mxu1 %v419_v0 }
  0x19   :  { %351 = vmatprep.subr.mxu0 %v419_v0  ;;  %v36_v15 = vadd.f32 %v35_v13, %v34_v11  ;;  %369 = vmatpush3.msra.mxu1 %v180_v42  ;;  %v30_v13 = vld [vmem:[%s506_s2 + $0x8] sm:$0xff]  ;;  %v284_v42 = vsub.s32 6, %v458_v28 }
  0x1a   :  { %352 = vmatpush3.msra.mxu0 %v62_v10  ;;  %370 = vmatprep.subr.mxu1 %v419_v0  ;;  %v174_v10 = vrot.slane %v463_v29, %v173_v6 }
  0x1b   :  { %353 = vmatprep.subr.mxu0 %v419_v0  ;;  %v37_v16 = vmul.f32 0.125, %v36_v15  ;;  %371 = vmatpush3.msra.mxu1 %v179_v43  ;;  %v187_v15 = vsub.s32 5, %v458_v28  ;;  %v289_v43 = vsub.s32 7, %v458_v28 }
  0x1c   :  { %354 = vmatpush3.msra.mxu0 %v61_v12  ;;  %372 = vmatprep.subr.mxu1 %v419_v0 }
  0x1d   :  { %355 = vmatprep.subr.mxu0 %v419_v0  ;;  %v38_v17 = vsub.f32 %v28_v4, %v37_v16  ;;  %373 = vmatpush3.msra.mxu1 %v178_v44  ;;  %v188_v16 = vrot.slane %v463_v29, %v187_v15 }
  0x1e   :  { %356 = vmatpush3.msra.mxu0 %v60_v14  ;;  %374 = vmatprep.subr.mxu1 %v419_v0  ;;  %v293_v14 = vsel %vm292_vm2, %v30_v13, 0.0 }
  0x1f   :  { %v39_v18 = vmul.f32 %v38_v17, %v38_v17  ;;  %375 = vmatpush3.msra.mxu1 %v177_v45  ;;  %294 = vadd.xlane.f32.xlu0 %v293_v14 }
  0x21   :  { %v40_v19 = vrot.slane %v39_v18, 4 }
  0x23   :  { %v41_v20 = vadd.f32 %v40_v19, %v39_v18 }
  0x25   :  { %v42_v21 = vrot.slane %v41_v20, 2 }
  0x27   :  { %v43_v22 = vadd.f32 %v42_v21, %v41_v20 }
  0x29   :  { %v44_v23 = vrot.slane %v43_v22, 1 }
  0x2b   :  { %v45_v24 = vadd.f32 %v44_v23, %v43_v22 }
  0x2d   :  { %v46_v25 = vmul.f32 0.125, %v45_v24 }
  0x2f   :  { %v47_v26 = vadd.f32 1e-05, %v46_v25 }
  0x31   :  { %384 = vrsqrt.f32 %v47_v26 }
  0x3e   :  { %v385_v32 = vpop.eup %384 }
  0x3f   :  { %v49_v33 = vmul.f32 %v385_v32, %v463_v29 }
  0x41   :  { %v53_v34 = vrot.slane %v49_v33, %v52_v30 }
  0x43   :  { %v54_v36 = vmul.f32 %v53_v34, %v38_v17 }
  0x45   :  { %v59_v37 = vadd.f32 %v58_v35, %v54_v36 }
  0x47   :  { %358 = vmatmul.mubr.msk.f32.vlgmr.msra.gmra.mxu0 %vm72_vm1, %v59_v37 }
 0x107   :  { %v142_v48 = vpop.f32.mrf.mxu0 }
 0x108   :  { %v143_v49 = vadd.f32 %v142_v48, %v71_v47  ;;  %v290_v47 = vrot.slane %v463_v29, %v289_v43  ;;  %v299_v48 = vrot.slane %v30_v13, %v57_v31 }
 0x109   :  { %v359_v50 = vpop.f32.mrf.mxu0 }
 0x10a   :  { %v146_v51 = vmax.f32 %v143_v49, 0.0 }
 0x10c   :  { %v147_v52 = vrot.slane %v146_v51, 4 }
 0x10e   :  { %v148_v53 = vadd.f32 %v147_v52, %v146_v51  ;;  %v295_v52 = vpop.xlane.xlu0 %294 }
 0x110   :  { %v149_v54 = vrot.slane %v148_v53, 2 }
 0x112   :  { %v150_v55 = vadd.f32 %v149_v54, %v148_v53  ;;  %v306_v53 = vrot.slane %v295_v52, %v52_v30 }
 0x114   :  { %v151_v56 = vrot.slane %v150_v55, 1 }
 0x116   :  { %v152_v57 = vadd.f32 %v151_v56, %v150_v55 }
 0x118   :  { %v153_v58 = vmul.f32 0.125, %v152_v57 }
 0x11a   :  { %v154_v59 = vsub.f32 %v146_v51, %v153_v58 }
 0x11c   :  { %v155_v60 = vmul.f32 %v154_v59, %v154_v59 }
 0x11e   :  { %v156_v61 = vrot.slane %v155_v60, 4 }
 0x120   :  { %v157_v62 = vadd.f32 %v156_v61, %v155_v60 }
 0x122   :  { %v158_v63 = vrot.slane %v157_v62, 2 }
 0x124   :  { %v159_v0 = vadd.f32 %v158_v63, %v157_v62 }
 0x126   :  { %v160_v1 = vrot.slane %v159_v0, 1 }
 0x128   :  { %v161_v2 = vadd.f32 %v160_v1, %v159_v0 }
 0x12a   :  { %v162_v3 = vmul.f32 0.125, %v161_v2 }
 0x12c   :  { %v163_v4 = vadd.f32 1e-05, %v162_v3 }
 0x12e   :  { %386 = vrsqrt.f32 %v163_v4 }
 0x13b   :  { %v387_v7 = vpop.eup %386 }
 0x13c   :  { %v165_v8 = vmul.f32 %v387_v7, %v463_v29 }
 0x13e   :  { %v169_v9 = vrot.slane %v165_v8, %v168_v5 }
 0x140   :  { %v170_v11 = vmul.f32 %v169_v9, %v154_v59 }
 0x142   :  { %v175_v12 = vadd.f32 %v174_v10, %v170_v11 }
 0x144   :  { %377 = vmatmul.mubr.msk.f32.vlgmr.msra.gmra.mxu1 %vm72_vm1, %v175_v12 }
 0x204   :  { %v258_v17 = vpop.f32.mrf.mxu1 }
 0x205   :  { %v259_v18 = vadd.f32 %v258_v17, %v188_v16 }
 0x206   :  { %v378_v19 = vpop.f32.mrf.mxu1 }
 0x207   :  { %v262_v20 = vmax.f32 %v259_v18, 0.0 }
 0x209   :  { %v263_v21 = vrot.slane %v262_v20, 4 }
 0x20b   :  { %v264_v22 = vadd.f32 %v263_v21, %v262_v20 }
 0x20d   :  { %v265_v23 = vrot.slane %v264_v22, 2 }
 0x20f   :  { %v266_v24 = vadd.f32 %v265_v23, %v264_v22 }
 0x211   :  { %v267_v25 = vrot.slane %v266_v24, 1 }
 0x213   :  { %v268_v26 = vadd.f32 %v267_v25, %v266_v24 }
 0x215   :  { %v269_v27 = vmul.f32 0.125, %v268_v26 }
 0x217   :  { %v270_v32 = vsub.f32 %v262_v20, %v269_v27 }
 0x219   :  { %v271_v33 = vmul.f32 %v270_v32, %v270_v32 }
 0x21b   :  { %v272_v34 = vrot.slane %v271_v33, 4 }
 0x21d   :  { %v273_v35 = vadd.f32 %v272_v34, %v271_v33 }
 0x21f   :  { %v274_v36 = vrot.slane %v273_v35, 2 }
 0x221   :  { %v275_v37 = vadd.f32 %v274_v36, %v273_v35 }
 0x223   :  { %v276_v38 = vrot.slane %v275_v37, 1 }
 0x225   :  { %v277_v39 = vadd.f32 %v276_v38, %v275_v37 }
 0x227   :  { %v278_v40 = vmul.f32 0.125, %v277_v39 }
 0x229   :  { %v279_v41 = vadd.f32 1e-05, %v278_v40 }
 0x22b   :  { %388 = vrsqrt.f32 %v279_v41 }
 0x238   :  { %v389_v44 = vpop.eup %388 }
 0x239   :  { %v281_v45 = vmul.f32 %v389_v44, %v463_v29 }
 0x23b   :  { %v285_v46 = vrot.slane %v281_v45, %v284_v42 }
 0x23d   :  { %v286_v49 = vmul.f32 %v285_v46, %v270_v32 }
 0x23f   :  { %v291_v50 = vadd.f32 %v290_v47, %v286_v49 }
 0x241   :  { %v300_v51 = vmul.f32 %v299_v48, %v291_v50 }
 0x243   :  { %301 = vadd.xlane.f32.xlu0 %v300_v51 }
 0x2cc   :  { %v302_v54 = vpop.xlane.xlu0 %301 }
 0x2cd   :  { %v307_v55 = vadd.f32 %v306_v53, %v302_v54 }
 0x2cf   :  { %v322_v56 = vmul.f32 -1.442695, %v307_v55 }
 0x2d1   :  { %390 = vpow2.f32 %v322_v56 }
 0x2de   :  { %v391_v57 = vpop.eup %390 }
 0x2df   :  { %v311_v58 = vadd.f32 1.0, %v391_v57 }
 0x2e1   :  { %392 = vrcp.f32 %v311_v58 }
 0x2ee   :  { %v393_v59 = vpop.eup %392 }
 0x2ef   :  { %314 = vst [vmem:[%s507_s3] sm:$0xff] %v393_v59 }
 0x2f0   :  { %319 = vsyncpa [#allocation3], 1 }

</bundles_post_ra>
